<compile_context>
chip_gen: v5e
topology: v5e:2x2
jax: 0.10.0
libtpu: 0.0.40
codegen_flags: <defaults>
</compile_context>

<pallas_src>
import numpy as np
import jax
import jax.numpy as jnp
from jax.experimental import pallas as pl
from jax.experimental.pallas import tpu as pltpu


def _mse_metric_kernel(o_ref, m_ref, g_ref, om_ref, gm_ref, sq_ref, ms_ref):
    """One (row-tile, col-tile) step.

    o/m/g/om/gm refs: (TR, TC) lane-dense tiles.
    sq/ms refs:       (TR, 128) resident accumulators (per-row sums,
                      broadcast across the 128 lanes so stores are unmasked).
    """
    j = pl.program_id(1)           # column (reduction) axis, innermost

    o = o_ref[...]
    m = m_ref[...]
    g = g_ref[...]

    om = o * m                     # output_masked
    gm = g * m                     # ground_truth_masked
    om_ref[...] = om
    gm_ref[...] = gm

    d = om - gm
    sq_rows = jnp.sum(d * d, axis=-1, keepdims=True)   # (TR, 1)
    m_rows = jnp.sum(m, axis=-1, keepdims=True)        # (TR, 1)
    sq_b = jnp.broadcast_to(sq_rows, sq_ref.shape)     # (TR, 128)
    m_b = jnp.broadcast_to(m_rows, ms_ref.shape)       # (TR, 128)

    @pl.when(j == 0)
    def _init():
        sq_ref[...] = sq_b
        ms_ref[...] = m_b

    @pl.when(j > 0)
    def _acc():
        sq_ref[...] += sq_b
        ms_ref[...] += m_b


def _pick_tile(n, candidates):
    """Largest candidate that evenly divides n, else the full extent."""
    for t in candidates:
        if n % t == 0:
            return t
    return n


def mse_metric(output, mask, ground_truth, normalizer=None, num_active=None):
    """Pallas implementation of MSE_metric.forward.

    Returns (mse_loss [b], output_masked [b, number, h, w],
             ground_truth_masked [b, number, h, w]).
    `normalizer` is accepted but unused (as in the PyTorch module).
    If `num_active` (the per-sample count of active channels, torch's
    `number`) is given statically, the channel gather is done fully on device
    with no host synchronization.
    """
    b, c, h, w = output.shape
    rows, hw = b * c, h * w

    # Lane-dense view: (b, c, h, w) -> (b*c, h*w).  Row-major, so this is a
    # metadata-only reshape.
    o2 = output.reshape(rows, hw).astype(jnp.float32)
    m2 = mask.reshape(rows, hw).astype(jnp.float32)
    g2 = ground_truth.reshape(rows, hw).astype(jnp.float32)

    tr = _pick_tile(rows, (128, 64, 32, 16, 8))        # sublane-aligned
    tc = _pick_tile(hw, (2048, 1024, 512, 256, 128))   # lane-aligned
    nr, nc = rows // tr, hw // tc

    data_spec = pl.BlockSpec((tr, tc), lambda i, j: (i, j))
    sum_spec = pl.BlockSpec((tr, 128), lambda i, j: (i, 0))   # resident over j

    om2, gm2, sqsum, msum = pl.pallas_call(
        _mse_metric_kernel,
        grid=(nr, nc),
        in_specs=[data_spec, data_spec, data_spec],
        out_specs=(data_spec, data_spec, sum_spec, sum_spec),
        out_shape=(
            jax.ShapeDtypeStruct((rows, hw), jnp.float32),
            jax.ShapeDtypeStruct((rows, hw), jnp.float32),
            jax.ShapeDtypeStruct((rows, 128), jnp.float32),
            jax.ShapeDtypeStruct((rows, 128), jnp.float32),
        ),
        compiler_params=pltpu.CompilerParams(
            dimension_semantics=("parallel", "arbitrary")),
    )(o2, m2, g2)

    # Tiny finish in XLA: (b, c) partial sums -> per-sample loss.
    sq_bc = sqsum[:, 0].reshape(b, c)       # sum((om-gm)^2) per (b, c)
    m_bc = msum[:, 0].reshape(b, c)         # mask.sum(dim=(2, 3))
    # NOTE: matches the PyTorch module — an all-zero mask for a sample
    # produces inf/NaN here.
    mse_loss = jnp.sum(sq_bc, axis=1) / jnp.sum(m_bc, axis=1)

    om = om2.reshape(b, c, h, w)
    gm = gm2.reshape(b, c, h, w)

    # ---- channel selection (torch.nonzero equivalent) ----
    # TODO(synk): if om/gm are only needed for the active channels, a second
    # pallas_call with a scalar-prefetch index_map could gather only `number`
    # channels and skip writing the inactive-channel portions to HBM.
    active = m_bc > 0                        # (b, c) bool, on device
    if num_active is None:
        # Data-dependent `number` (torch .item()) -> one tiny host sync.
        act_np = np.asarray(jax.device_get(active))
        num_active = int(act_np[0].sum())
        i0, i1 = np.nonzero(act_np)
        idx_0 = jnp.asarray(i0)
        idx_1 = jnp.asarray(i1)
    else:
        # Static count -> fully on-device, no host round-trip.
        idx_0, idx_1 = jnp.nonzero(active, size=b * num_active, fill_value=0)

    output_masked = om[idx_0, idx_1].reshape(b, num_active, h, w)
    ground_truth_masked = gm[idx_0, idx_1].reshape(b, num_active, h, w)

    return mse_loss, output_masked, ground_truth_masked


if __name__ == "__main__":
    b, c, h, w = 2, 4, 16, 16

    key = jax.random.PRNGKey(0)
    k1, k2, k3, k4 = jax.random.split(key, 4)
    output = jax.random.normal(k1, (b, c, h, w), dtype=jnp.float32)
    ground_truth = jax.random.normal(k2, (b, c, h, w), dtype=jnp.float32)

    # Binary mask: channels 0 and 2 are (partially) active, channels 1 and 3
    # are entirely zero -> "number" of selected channels per sample is 2.
    active_part = (jax.random.uniform(k3, (b, 2, h, w)) > 0.5).astype(jnp.float32)
    mask = jnp.zeros((b, c, h, w), dtype=jnp.float32)
    mask = mask.at[:, jnp.array([0, 2])].set(active_part)

    normalizer = jax.random.uniform(k4, (b,), dtype=jnp.float32)  # unused, as in torch

    # Device-only path (static channel count -> no host sync).
    mse_loss, out_masked, gt_masked = mse_metric(
        output, mask, ground_truth, normalizer, num_active=2)
    jax.block_until_ready((mse_loss, out_masked, gt_masked))

    # Pure numpy reference check.
    on = np.asarray(output)
    gn = np.asarray(ground_truth)
    mn = np.asarray(mask)
    ref_loss = ((on * mn - gn * mn) ** 2).sum(axis=(1, 2, 3)) / mn.sum(axis=(1, 2, 3))
    np.testing.assert_allclose(np.asarray(mse_loss), ref_loss, rtol=1e-5, atol=1e-5)

    assert out_masked.shape == (b, 2, h, w)
    assert gt_masked.shape == (b, 2, h, w)
    ref_om = (on * mn)[:, [0, 2]]
    ref_gm = (gn * mn)[:, [0, 2]]
    np.testing.assert_allclose(np.asarray(out_masked), ref_om, rtol=1e-6, atol=1e-6)
    np.testing.assert_allclose(np.asarray(gt_masked), ref_gm, rtol=1e-6, atol=1e-6)

    # Fallback path (data-dependent `number`, matches torch .item() semantics).
    mse_loss2, out_masked2, gt_masked2 = mse_metric(
        output, mask, ground_truth, normalizer)
    jax.block_until_ready((mse_loss2, out_masked2, gt_masked2))
    np.testing.assert_allclose(np.asarray(mse_loss2), ref_loss, rtol=1e-5, atol=1e-5)
    np.testing.assert_allclose(np.asarray(out_masked2), ref_om, rtol=1e-6, atol=1e-6)

    print("KERNEL_OK")
</pallas_src>

<mosaic_0001>
module attributes {stable_mosaic.version = 11 : i64} {
  func.func @_mse_metric_kernel(%arg0: i32, %arg1: i32, %arg2: memref<8x256xf32, #tpu.memory_space<vmem>>, %arg3: memref<8x256xf32, #tpu.memory_space<vmem>>, %arg4: memref<8x256xf32, #tpu.memory_space<vmem>>, %arg5: memref<8x256xf32, #tpu.memory_space<vmem>>, %arg6: memref<8x256xf32, #tpu.memory_space<vmem>>, %arg7: memref<8x128xf32, #tpu.memory_space<vmem>>, %arg8: memref<8x128xf32, #tpu.memory_space<vmem>>) attributes {dimension_semantics = [#tpu.dimension_semantics<parallel>, #tpu.dimension_semantics<arbitrary>], iteration_bounds = array<i64: 1, 1>, scalar_prefetch = 0 : i64, scratch_operands = 0 : i64, tpu.core_type = #tpu.core_type<tc>, window_params = [{transform_indices = @transform_0, window_bounds = array<i64: 8, 256>}, {transform_indices = @transform_1, window_bounds = array<i64: 8, 256>}, {transform_indices = @transform_2, window_bounds = array<i64: 8, 256>}, {transform_indices = @transform_3, window_bounds = array<i64: 8, 256>}, {transform_indices = @transform_4, window_bounds = array<i64: 8, 256>}, {transform_indices = @transform_5, window_bounds = array<i64: 8, 128>}, {transform_indices = @transform_6, window_bounds = array<i64: 8, 128>}]} {
    %c0 = arith.constant 0 : index
    %c0_0 = arith.constant 0 : index
    %0 = vector.load %arg2[%c0, %c0_0] : memref<8x256xf32, #tpu.memory_space<vmem>>, vector<8x256xf32>
    %c0_1 = arith.constant 0 : index
    %c0_2 = arith.constant 0 : index
    %1 = vector.load %arg3[%c0_1, %c0_2] : memref<8x256xf32, #tpu.memory_space<vmem>>, vector<8x256xf32>
    %c0_3 = arith.constant 0 : index
    %c0_4 = arith.constant 0 : index
    %2 = vector.load %arg4[%c0_3, %c0_4] : memref<8x256xf32, #tpu.memory_space<vmem>>, vector<8x256xf32>
    %3 = arith.mulf %0, %1 : vector<8x256xf32>
    %4 = arith.mulf %2, %1 : vector<8x256xf32>
    %c0_5 = arith.constant 0 : index
    %c0_6 = arith.constant 0 : index
    %5 = vector.load %arg5[%c0_5, %c0_6] : memref<8x256xf32, #tpu.memory_space<vmem>>, vector<8x256xf32>
    tpu.vector_store %arg5[%c0_5, %c0_6], %3 {strides = array<i32>} : memref<8x256xf32, #tpu.memory_space<vmem>>, vector<8x256xf32>,
    %c0_7 = arith.constant 0 : index
    %c0_8 = arith.constant 0 : index
    %6 = vector.load %arg6[%c0_7, %c0_8] : memref<8x256xf32, #tpu.memory_space<vmem>>, vector<8x256xf32>
    tpu.vector_store %arg6[%c0_7, %c0_8], %4 {strides = array<i32>} : memref<8x256xf32, #tpu.memory_space<vmem>>, vector<8x256xf32>,
    %7 = arith.subf %3, %4 : vector<8x256xf32>
    %8 = arith.mulf %7, %7 : vector<8x256xf32>
    %cst = arith.constant dense<0.000000e+00> : vector<8xf32>
    %9 = vector.multi_reduction <add>, %8, %cst [1] : vector<8x256xf32> to vector<8xf32>
    %10 = vector.shape_cast %9 : vector<8xf32> to vector<8x1xf32>
    %cst_9 = arith.constant dense<0.000000e+00> : vector<8xf32>
    %11 = vector.multi_reduction <add>, %1, %cst_9 [1] : vector<8x256xf32> to vector<8xf32>
    %12 = vector.shape_cast %11 : vector<8xf32> to vector<8x1xf32>
    %13 = vector.shape_cast %10 : vector<8x1xf32> to vector<8x1xf32>
    %14 = vector.broadcast %13 : vector<8x1xf32> to vector<8x128xf32>
    %15 = vector.shape_cast %12 : vector<8x1xf32> to vector<8x1xf32>
    %16 = vector.broadcast %15 : vector<8x1xf32> to vector<8x128xf32>
    %c0_i32 = arith.constant 0 : i32
    %17 = arith.cmpi eq, %arg1, %c0_i32 : i32
    %18 = arith.extui %17 : i1 to i32
    %c0_i32_10 = arith.constant 0 : i32
    %19 = arith.cmpi ne, %18, %c0_i32_10 : i32
    scf.if %19 {
      %c0_13 = arith.constant 0 : index
      %c0_14 = arith.constant 0 : index
      %23 = vector.load %arg7[%c0_13, %c0_14] : memref<8x128xf32, #tpu.memory_space<vmem>>, vector<8x128xf32>
      tpu.vector_store %arg7[%c0_13, %c0_14], %14 {strides = array<i32>} : memref<8x128xf32, #tpu.memory_space<vmem>>, vector<8x128xf32>,
      %c0_15 = arith.constant 0 : index
      %c0_16 = arith.constant 0 : index
      %24 = vector.load %arg8[%c0_15, %c0_16] : memref<8x128xf32, #tpu.memory_space<vmem>>, vector<8x128xf32>
      tpu.vector_store %arg8[%c0_15, %c0_16], %16 {strides = array<i32>} : memref<8x128xf32, #tpu.memory_space<vmem>>, vector<8x128xf32>,
    } else {
    }
    %c0_i32_11 = arith.constant 0 : i32
    %20 = arith.cmpi sgt, %arg1, %c0_i32_11 : i32
    %21 = arith.extui %20 : i1 to i32
    %c0_i32_12 = arith.constant 0 : i32
    %22 = arith.cmpi ne, %21, %c0_i32_12 : i32
    scf.if %22 {
      %c0_13 = arith.constant 0 : index
      %c0_14 = arith.constant 0 : index
      %23 = vector.load %arg7[%c0_13, %c0_14] : memref<8x128xf32, #tpu.memory_space<vmem>>, vector<8x128xf32>
      %24 = arith.addf %23, %14 : vector<8x128xf32>
      %c0_15 = arith.constant 0 : index
      %c0_16 = arith.constant 0 : index
      %25 = vector.load %arg7[%c0_15, %c0_16] : memref<8x128xf32, #tpu.memory_space<vmem>>, vector<8x128xf32>
      tpu.vector_store %arg7[%c0_15, %c0_16], %24 {strides = array<i32>} : memref<8x128xf32, #tpu.memory_space<vmem>>, vector<8x128xf32>,
      %c0_17 = arith.constant 0 : index
      %c0_18 = arith.constant 0 : index
      %26 = vector.load %arg8[%c0_17, %c0_18] : memref<8x128xf32, #tpu.memory_space<vmem>>, vector<8x128xf32>
      %27 = arith.addf %26, %16 : vector<8x128xf32>
      %c0_19 = arith.constant 0 : index
      %c0_20 = arith.constant 0 : index
      %28 = vector.load %arg8[%c0_19, %c0_20] : memref<8x128xf32, #tpu.memory_space<vmem>>, vector<8x128xf32>
      tpu.vector_store %arg8[%c0_19, %c0_20], %27 {strides = array<i32>} : memref<8x128xf32, #tpu.memory_space<vmem>>, vector<8x128xf32>,
    } else {
    }
    return
  }
  func.func @transform_0(%arg0: i32, %arg1: i32) -> (i32, i32) {
    %c0_i32 = arith.constant 0 : i32
    return %arg0, %arg1 : i32, i32
  }
  func.func @transform_1(%arg0: i32, %arg1: i32) -> (i32, i32) {
    %c0_i32 = arith.constant 0 : i32
    return %arg0, %arg1 : i32, i32
  }
  func.func @transform_2(%arg0: i32, %arg1: i32) -> (i32, i32) {
    %c0_i32 = arith.constant 0 : i32
    return %arg0, %arg1 : i32, i32
  }
  func.func @transform_3(%arg0: i32, %arg1: i32) -> (i32, i32) {
    %c0_i32 = arith.constant 0 : i32
    return %arg0, %arg1 : i32, i32
  }
  func.func @transform_4(%arg0: i32, %arg1: i32) -> (i32, i32) {
    %c0_i32 = arith.constant 0 : i32
    return %arg0, %arg1 : i32, i32
  }
  func.func @transform_5(%arg0: i32, %arg1: i32) -> (i32, i32) {
    %c0_i32 = arith.constant 0 : i32
    %c0_i32_0 = arith.constant 0 : i32
    return %arg0, %c0_i32 : i32, i32
  }
  func.func @transform_6(%arg0: i32, %arg1: i32) -> (i32, i32) {
    %c0_i32 = arith.constant 0 : i32
    %c0_i32_0 = arith.constant 0 : i32
    return %arg0, %c0_i32 : i32, i32
  }
}

</mosaic_0001>

<bundles_post_ra>
// kernel: tpu_custom_call.1
= control target key start
LH: loop header
LB: loop body
LE: loop exit
PB: predicated region body
PF: predicated region fallthrough
CT: control target
= control target key end

     0   :  { %12 = vsyncpa [#allocation3], 0  ;;  %s415_s0 = inlined_call_operand.hbm [shape: f32[8,256], index: 0, kind: input, shape index: {}]   ;;  %s416_s1 = inlined_call_operand.hbm [shape: f32[8,256], index: 1, kind: input, shape index: {}]   ;;  %s417_s2 = inlined_call_operand.hbm [shape: f32[8,256], index: 2, kind: input, shape index: {}]   ;;  %s418_s3 = inlined_call_operand.hbm [shape: f32[8,256], index: 3, kind: output, shape index: {0}]   ;;  %s419_s4 = inlined_call_operand.hbm [shape: f32[8,256], index: 4, kind: output, shape index: {1}]   ;;  %s420_s5 = inlined_call_operand.hbm [shape: f32[8,128], index: 5, kind: output, shape index: {2}]   ;;  %s421_s6 = inlined_call_operand.hbm [shape: f32[8,128], index: 6, kind: output, shape index: {3}]  }
   0x1   :  { %13 = vsyncpa [#allocation6], 0 }
   0x2   :  { %14 = vsyncpa [#allocation4], 0 }
   0x3   :  { %15 = vsyncpa [#allocation10], 0  ;;  %s33_s23 = sshll.u32 %s416_s1, 4  ;;  %s34_s23 = int_to_ptr.hbm [resolvable:$true] %s33_s23 }
   0x4   :  { %16 = vsyncpa [#allocation13], 0  ;;  %s352_s24 = smov [#allocation5]   ;;  %s22_s28 = sshll.u32 %s415_s0, 4  ;;  %s23_s28 = int_to_ptr.hbm [resolvable:$true] %s22_s28 }
   0x5   :  { %s35_s25 = sshll.u32 %s352_s24, 4  ;;  %s353_s29 = smov [#allocation2]   ;;  %s36_s25 = int_to_ptr.vmem [resolvable:$true] %s35_s25 }
   0x6   :  { %38 = dma.hbm_to_vmem [thread:$0]  %s34_s23, 256, %s36_s25, [#allocation6]  }
   0x7   :  { %s24_s30 = sshll.u32 %s353_s29, 4  ;;  %s44_s9 = sshll.u32 %s417_s2, 4  ;;  %s25_s30 = int_to_ptr.vmem [resolvable:$true] %s24_s30  ;;  %s45_s9 = int_to_ptr.hbm [resolvable:$true] %s44_s9 }
   0x8   :  { %27 = dma.hbm_to_vmem [thread:$0]  %s23_s28, 256, %s25_s30, [#allocation3]  }
   0x9   :  { %s354_s1 = smov [#allocation7]  }
   0xa   :  { %s46_s10 = sshll.u32 %s354_s1, 4  ;;  %s47_s10 = int_to_ptr.vmem [resolvable:$true] %s46_s10 }
   0xb   :  { %49 = dma.hbm_to_vmem [thread:$0]  %s45_s9, 256, %s47_s10, [#allocation6]  }
   0xc   :  { %342 = dma.done.wait [#allocation3], 256  }
   0xd   :  { %343 = vsyncadd [#allocation3], 4294967040 }
   0xe   :  { %344 = dma.done.wait [#allocation6], 512  }
   0xf   :  { %345 = vsyncadd [#allocation6], 4294966784  ;;  %v62_v0 = vld [vmem:[#allocation2] sm:$0xff]  ;;  %v63_v1 = vld [vmem:[#allocation2 + $0x8] sm:$0xff]  ;;  %s355_s0 = smov [#allocation9]   ;;  %s120_s13 = sshll.u32 %s419_s4, 4  ;;  %s121_s13 = int_to_ptr.hbm [resolvable:$true] %s120_s13 }
  0x10   :  { %v64_v2 = vld [vmem:[#allocation5] sm:$0xff]  ;;  %v65_v3 = vld [vmem:[#allocation5 + $0x8] sm:$0xff]  ;;  %v66_v4 = vld [vmem:[#allocation7] sm:$0xff]  ;;  %s118_s2 = sshll.u32 %s355_s0, 4  ;;  %s109_s16 = sshll.u32 %s418_s3, 4  ;;  %s119_s2 = int_to_ptr.vmem [resolvable:$true] %s118_s2  ;;  %s110_s16 = int_to_ptr.hbm [resolvable:$true] %s109_s16 }
  0x11   :  { %v67_v5 = vld [vmem:[#allocation7 + $0x8] sm:$0xff]  ;;  %v68_v6 = vmul.f32 %v64_v2, %v62_v0  ;;  %v69_v7 = vmul.f32 %v65_v3, %v63_v1  ;;  %v70_v8 = vmul.f32 %v66_v4, %v64_v2  ;;  %s356_s17 = smov [#allocation8]   ;;  %v83_v15 = vadd.f32 %v65_v3, %v64_v2  ;;  %s357_s4 = smov [#allocation11]  }
  0x12   :  { %v71_v9 = vmul.f32 %v67_v5, %v65_v3  ;;  %s107_s18 = sshll.u32 %s356_s17, 4  ;;  %s129_s19 = sshll.u32 %s357_s4, 4  ;;  %s108_s18 = int_to_ptr.vmem [resolvable:$true] %s107_s18  ;;  %s130_s19 = int_to_ptr.vmem [resolvable:$true] %s129_s19 }
  0x13   :  { %72 = vst [vmem:[#allocation8] sm:$0xff] %v68_v6  ;;  %v76_v10 = vsub.f32 %v68_v6, %v70_v8  ;;  %s131_s22 = sshll.u32 %s420_s5, 4  ;;  %s358_s3 = smov [#allocation12]   ;;  %s132_s22 = int_to_ptr.hbm [resolvable:$true] %s131_s22 }
  0x14   :  { %v77_v11 = vsub.f32 %v69_v7, %v71_v9  ;;  %73 = vst [vmem:[#allocation8 + $0x8] sm:$0xff] %v69_v7  ;;  %s140_s23 = sshll.u32 %s358_s3, 4  ;;  %s142_s26 = sshll.u32 %s421_s6, 4  ;;  %s141_s23 = int_to_ptr.vmem [resolvable:$true] %s140_s23  ;;  %s143_s26 = int_to_ptr.hbm [resolvable:$true] %s142_s26 }
  0x15   :  { %74 = vst [vmem:[#allocation9] sm:$0xff] %v70_v8  ;;  %v78_v12 = vmul.f32 %v76_v10, %v76_v10  ;;  %112 = dma.vmem_to_hbm [thread:$0]  %s108_s18, 256, %s110_s16, [#allocation4]  }
  0x16   :  { %v79_v13 = vmul.f32 %v77_v11, %v77_v11  ;;  %75 = vst [vmem:[#allocation9 + $0x8] sm:$0xff] %v71_v9 }
  0x17   :  { %123 = dma.vmem_to_hbm [thread:$0]  %s119_s2, 256, %s121_s13, [#allocation10]  }
  0x18   :  { %v80_v14 = vadd.f32 %v79_v13, %v78_v12 }
  0x1a   :  { %81 = vadd.xlane.f32.xlu0 %v80_v14 }
  0x22   :  { %84 = vadd.xlane.f32.xlu0 %v83_v15 }
  0x8d   :  { %v82_v16 = vpop.xlane.xlu0 %81 }
  0x8e   :  { %90 = vst [vmem:[#allocation11] sm:$0xff] %v82_v16 }
  0x8f   :  { %134 = dma.vmem_to_hbm [thread:$0]  %s130_s19, 128, %s132_s22, [#allocation10]  }
  0x95   :  { %v85_v17 = vpop.xlane.xlu0 %84 }
  0x96   :  { %91 = vst [vmem:[#allocation12] sm:$0xff] %v85_v17 }
  0x97   :  { %145 = dma.vmem_to_hbm [thread:$0]  %s141_s23, 128, %s143_s26, [#allocation13]  }
  0x98   :  { %346 = dma.done.wait [#allocation4], 256  }
  0x99   :  { %347 = vsyncadd [#allocation4], 4294967040 }
  0x9a   :  { %348 = dma.done.wait [#allocation10], 384  }
  0x9b   :  { %349 = vsyncadd [#allocation10], 4294966912 }
  0x9c   :  { %350 = dma.done.wait [#allocation13], 128  }
  0x9d   :  { %351 = vsyncadd [#allocation13], 4294967168 }
  0x9e   :  { %162 = vsyncpa [#allocation3], 1 }
  0x9f   :  { %163 = vsyncpa [#allocation6], 1 }
  0xa0   :  { %164 = vsyncpa [#allocation4], 1 }
  0xa1   :  { %165 = vsyncpa [#allocation10], 1 }
  0xa2   :  { %166 = vsyncpa [#allocation13], 1 }

</bundles_post_ra>
